<compile_context>
chip_gen: v7x
topology: tpu7x:2x2x1
jax: 0.10.0
libtpu: 0.0.40
codegen_flags: <defaults>
</compile_context>

<pallas_src>
import functools

import jax
import jax.numpy as jnp
from jax.experimental import pallas as pl
from jax.experimental.pallas import tpu as pltpu


# ----------------------------- Pallas kernel --------------------------------
def _loss_kernel(std_ref, sr_ref, hr_ref, z_ref, w_ref, affine_ref, mask_ref,
                 loss_ref, *, channels, wp, inner):
    b = pl.program_id(0)
    s = std_ref[b]                            # per-batch marginal-prob std (SMEM scalar)

    sr = sr_ref[0]                            # (C, P) padded+flattened SR
    zb = z_ref[0]                             # (C, P) padded+flattened noise
    pert = hr_ref[0] + s * zb                 # perturbed = HR + std*z (zero halo stays 0)
    x_in = jnp.concatenate([sr, pert], axis=0)          # (2C, P) = cat([SR, perturbed])

    # 3x3 SAME conv == 9 accumulating shifted matmuls on the flat padded slab.
    acc = jnp.zeros((channels, inner), dtype=jnp.float32)
    for dy in range(3):
        for dx in range(3):
            off = dy * wp + dx
            acc = acc + jnp.dot(w_ref[dy * 3 + dx],
                                x_in[:, off:off + inner],
                                preferred_element_type=jnp.float32)   # (C, L) f32

    score = acc + affine_ref[0]               # + (bias + t * w_t), per-batch (C,1) column

    o0 = wp + 1                               # first interior flat position
    resid = score * s + zb[:, o0:o0 + inner]  # score*std + z over the interior window
    # Mask away pad lanes; square fused into the reduce: C (sublane) first, then lanes.
    col = jnp.sum(mask_ref[...] * resid * resid, axis=0, keepdims=True)   # (1, L)
    loss_ref[...] = jnp.broadcast_to(jnp.sum(col), (1, 1, 128)).astype(jnp.float32)


# ------------------------------ glue / wrapper -------------------------------
def gaussian_diffusion_loss(x, z, random_t, w_conv, bias, w_t, sigma=25.0):
    """Pallas implementation of GaussianDiffusion.forward == loss_fn.

    x:        dict with 'HR' and 'SR', both NCHW float32, shape (B, C, H, W)
    z:        noise, same shape as HR   (externalized torch.randn_like)
    random_t: (B,) float32              (externalized torch.rand-based draw)
    w_conv:   (C, 2C, 3, 3) synthetic denoiser conv weight (OIHW, PyTorch order)
    bias:     (C,) conv bias
    w_t:      (C,) per-channel time-embedding weight
    returns:  (B,) per-sample loss
    """
    hr, sr = x['HR'], x['SR']
    B, C, H, W = hr.shape
    Hp, Wp = H + 2, W + 2
    P = Hp * Wp
    L = P - 2 * (Wp + 1)        # contiguous flat range covering every interior pixel

    # marginal_prob_std and the per-batch affine term of the synthetic denoiser.
    std = jnp.sqrt((sigma ** (2.0 * random_t) - 1.0)
                   / (2.0 * jnp.log(sigma))).astype(jnp.float32)        # (B,)
    affine = (bias[None, :] + random_t[:, None] * w_t[None, :]
              ).astype(jnp.float32)[:, :, None]                         # (B, C, 1)

    # Raw NCHW data, zero-padded by 1 px (SAME halo) and flattened to (B, C, P).
    def pad_flat(a):
        ap = jnp.pad(a.astype(jnp.float32), ((0, 0), (0, 0), (1, 1), (1, 1)))
        return ap.reshape(B, C, P)

    sr_f, hr_f, z_f = pad_flat(sr), pad_flat(hr), pad_flat(z)

    # Interior-pixel mask over the flat sub-range the kernel computes on.
    mask = jnp.pad(jnp.ones((H, W), jnp.float32), ((1, 1), (1, 1)))
    mask = mask.reshape(1, P)[:, Wp + 1:Wp + 1 + L]                      # (1, L)

    # Conv weights reordered per tap: w9[kh*3+kw] is the (C_out, 2C_in) matrix.
    w9 = jnp.transpose(w_conv, (2, 3, 0, 1)).reshape(9, C, 2 * C).astype(jnp.float32)

    def img_blk():
        return pl.BlockSpec((1, C, P), lambda b, std_s: (b, 0, 0))

    out = pl.pallas_call(
        functools.partial(_loss_kernel, channels=C, wp=Wp, inner=L),
        out_shape=jax.ShapeDtypeStruct((B, 1, 128), jnp.float32),
        grid_spec=pltpu.PrefetchScalarGridSpec(
            num_scalar_prefetch=1,                         # std -> SMEM scalars
            grid=(B,),
            in_specs=[img_blk(),                           # SR   (1, C, P)
                      img_blk(),                           # HR   (1, C, P)
                      img_blk(),                           # z    (1, C, P)
                      pl.BlockSpec((9, C, 2 * C), lambda b, std_s: (0, 0, 0)),  # w9
                      pl.BlockSpec((1, C, 1), lambda b, std_s: (b, 0, 0)),      # affine
                      pl.BlockSpec((1, L), lambda b, std_s: (0, 0))],           # mask
            out_specs=pl.BlockSpec((1, 1, 128), lambda b, std_s: (b, 0, 0)),
        ),
        compiler_params=pltpu.CompilerParams(dimension_semantics=("parallel",)),
    )(std, sr_f, hr_f, z_f, w9, affine, mask)

    return out[:, 0, 0]


# ------------------------------ pure-JAX reference ---------------------------
def reference_loss(x, z, random_t, w_conv, bias, w_t, sigma=25.0):
    hr, sr = x['HR'], x['SR']
    std = jnp.sqrt((sigma ** (2.0 * random_t) - 1.0) / (2.0 * jnp.log(sigma)))
    pert = hr + z * std[:, None, None, None]
    x_in = jnp.concatenate([sr, pert], axis=1)                   # NCHW cat on channels
    score = jax.lax.conv_general_dilated(
        x_in, w_conv, window_strides=(1, 1), padding='SAME',
        dimension_numbers=('NCHW', 'OIHW', 'NCHW'),
        precision=jax.lax.Precision.HIGHEST)
    score = score + bias[None, :, None, None] + random_t[:, None, None, None] * w_t[None, :, None, None]
    resid = score * std[:, None, None, None] + z
    return jnp.sum(resid ** 2, axis=(1, 2, 3))


# ----------------------------------- main ------------------------------------
if __name__ == "__main__":
    key = jax.random.PRNGKey(0)
    B, C, H, W = 2, 4, 16, 16        # small shapes consistent with the module
    eps = 1e-5

    ks = jax.random.split(key, 7)
    hr = jax.random.normal(ks[0], (B, C, H, W), jnp.float32)
    sr = jax.random.normal(ks[1], (B, C, H, W), jnp.float32)

    # deterministic synthetic denoiser parameters
    w_conv = jax.random.normal(ks[2], (C, 2 * C, 3, 3), jnp.float32) * 0.1
    bias = jax.random.normal(ks[3], (C,), jnp.float32) * 0.1
    w_t = jax.random.normal(ks[4], (C,), jnp.float32) * 0.1

    # the module's internal randomness (torch.rand / torch.randn), made deterministic
    random_t = jax.random.uniform(ks[5], (B,), jnp.float32) * (1.0 - eps) + eps
    z = jax.random.normal(ks[6], (B, C, H, W), jnp.float32)

    x = {'HR': hr, 'SR': sr}

    loss = gaussian_diffusion_loss(x, z, random_t, w_conv, bias, w_t)
    loss = jax.block_until_ready(loss)

    ref = reference_loss(x, z, random_t, w_conv, bias, w_t)
    assert loss.shape == (B,), loss.shape
    assert jnp.allclose(loss, ref, rtol=1e-2, atol=1e-2), (loss, ref)

    print("KERNEL_OK")
</pallas_src>

<mosaic_0001>
module attributes {stable_mosaic.version = 11 : i64} {
  func.func @_loss_kernel(%arg0: i32, %arg1: memref<2xf32, #tpu.memory_space<smem>>, %arg2: memref<1x4x324xf32, #tpu.memory_space<vmem>>, %arg3: memref<1x4x324xf32, #tpu.memory_space<vmem>>, %arg4: memref<1x4x324xf32, #tpu.memory_space<vmem>>, %arg5: memref<9x4x8xf32, #tpu.memory_space<vmem>>, %arg6: memref<1x4x1xf32, #tpu.memory_space<vmem>>, %arg7: memref<1x286xf32, #tpu.memory_space<vmem>>, %arg8: memref<1x1x128xf32, #tpu.memory_space<vmem>>) attributes {dimension_semantics = [#tpu.dimension_semantics<parallel>], iteration_bounds = array<i64: 2>, scalar_prefetch = 1 : i64, scratch_operands = 0 : i64, tpu.core_type = #tpu.core_type<tc>, window_params = [{transform_indices = @transform_0, window_bounds = array<i64: 1, 4, 324>}, {transform_indices = @transform_1, window_bounds = array<i64: 1, 4, 324>}, {transform_indices = @transform_2, window_bounds = array<i64: 1, 4, 324>}, {pipeline_mode = #tpu.pipeline_mode<synchronous>, transform_indices = @transform_3, window_bounds = array<i64: 9, 4, 8>}, {transform_indices = @transform_4, window_bounds = array<i64: 1, 4, 1>}, {pipeline_mode = #tpu.pipeline_mode<synchronous>, transform_indices = @transform_5, window_bounds = array<i64: 1, 286>}, {transform_indices = @transform_6, window_bounds = array<i64: 1, 1, 128>}]} {
    %0 = arith.index_cast %arg0 : i32 to index
    %1 = memref.load %arg1[%0] : memref<2xf32, #tpu.memory_space<smem>>
    %c0 = arith.constant 0 : index
    %c0_0 = arith.constant 0 : index
    %c0_1 = arith.constant 0 : index
    %2 = vector.load %arg2[%c0, %c0_0, %c0_1] : memref<1x4x324xf32, #tpu.memory_space<vmem>>, vector<1x4x324xf32>
    %3 = vector.shape_cast %2 : vector<1x4x324xf32> to vector<4x324xf32>
    %c0_2 = arith.constant 0 : index
    %c0_3 = arith.constant 0 : index
    %c0_4 = arith.constant 0 : index
    %4 = vector.load %arg4[%c0_2, %c0_3, %c0_4] : memref<1x4x324xf32, #tpu.memory_space<vmem>>, vector<1x4x324xf32>
    %5 = vector.shape_cast %4 : vector<1x4x324xf32> to vector<4x324xf32>
    %c0_5 = arith.constant 0 : index
    %c0_6 = arith.constant 0 : index
    %c0_7 = arith.constant 0 : index
    %6 = vector.load %arg3[%c0_5, %c0_6, %c0_7] : memref<1x4x324xf32, #tpu.memory_space<vmem>>, vector<1x4x324xf32>
    %7 = vector.shape_cast %6 : vector<1x4x324xf32> to vector<4x324xf32>
    %8 = vector.broadcast %1 : f32 to vector<4x324xf32>
    %9 = arith.mulf %8, %5 : vector<4x324xf32>
    %10 = arith.addf %7, %9 : vector<4x324xf32>
    %11 = tpu.concatenate %3, %10 in 0 : vector<4x324xf32>, vector<4x324xf32> -> vector<8x324xf32>
    %cst = arith.constant 0.000000e+00 : f32
    %12 = vector.broadcast %cst : f32 to vector<4x286xf32>
    %c0_8 = arith.constant 0 : index
    %c0_9 = arith.constant 0 : index
    %c0_10 = arith.constant 0 : index
    %13 = vector.load %arg5[%c0_8, %c0_9, %c0_10] : memref<9x4x8xf32, #tpu.memory_space<vmem>>, vector<1x4x8xf32>
    %14 = vector.shape_cast %13 : vector<1x4x8xf32> to vector<4x8xf32>
    %15 = vector.extract_strided_slice %11 {offsets = [0, 0], sizes = [8, 286], strides = [1, 1]} : vector<8x324xf32> to vector<8x286xf32>
    %cst_11 = arith.constant dense<0.000000e+00> : vector<4x286xf32>
    %16 = tpu.matmul %14, %15, %cst_11 {dimension_numbers = #tpu.dot_dimension_numbers<[1], [0], [0], [1], [0, 0, 1, 1], [], []>} : vector<4x8xf32>, vector<8x286xf32>, vector<4x286xf32> -> vector<4x286xf32>
    %17 = arith.addf %12, %16 : vector<4x286xf32>
    %c1 = arith.constant 1 : index
    %c0_12 = arith.constant 0 : index
    %c0_13 = arith.constant 0 : index
    %18 = vector.load %arg5[%c1, %c0_12, %c0_13] : memref<9x4x8xf32, #tpu.memory_space<vmem>>, vector<1x4x8xf32>
    %19 = vector.shape_cast %18 : vector<1x4x8xf32> to vector<4x8xf32>
    %20 = vector.extract_strided_slice %11 {offsets = [0, 1], sizes = [8, 286], strides = [1, 1]} : vector<8x324xf32> to vector<8x286xf32>
    %cst_14 = arith.constant dense<0.000000e+00> : vector<4x286xf32>
    %21 = tpu.matmul %19, %20, %cst_14 {dimension_numbers = #tpu.dot_dimension_numbers<[1], [0], [0], [1], [0, 0, 1, 1], [], []>} : vector<4x8xf32>, vector<8x286xf32>, vector<4x286xf32> -> vector<4x286xf32>
    %22 = arith.addf %17, %21 : vector<4x286xf32>
    %c2 = arith.constant 2 : index
    %c0_15 = arith.constant 0 : index
    %c0_16 = arith.constant 0 : index
    %23 = vector.load %arg5[%c2, %c0_15, %c0_16] : memref<9x4x8xf32, #tpu.memory_space<vmem>>, vector<1x4x8xf32>
    %24 = vector.shape_cast %23 : vector<1x4x8xf32> to vector<4x8xf32>
    %25 = vector.extract_strided_slice %11 {offsets = [0, 2], sizes = [8, 286], strides = [1, 1]} : vector<8x324xf32> to vector<8x286xf32>
    %cst_17 = arith.constant dense<0.000000e+00> : vector<4x286xf32>
    %26 = tpu.matmul %24, %25, %cst_17 {dimension_numbers = #tpu.dot_dimension_numbers<[1], [0], [0], [1], [0, 0, 1, 1], [], []>} : vector<4x8xf32>, vector<8x286xf32>, vector<4x286xf32> -> vector<4x286xf32>
    %27 = arith.addf %22, %26 : vector<4x286xf32>
    %c3 = arith.constant 3 : index
    %c0_18 = arith.constant 0 : index
    %c0_19 = arith.constant 0 : index
    %28 = vector.load %arg5[%c3, %c0_18, %c0_19] : memref<9x4x8xf32, #tpu.memory_space<vmem>>, vector<1x4x8xf32>
    %29 = vector.shape_cast %28 : vector<1x4x8xf32> to vector<4x8xf32>
    %30 = vector.extract_strided_slice %11 {offsets = [0, 18], sizes = [8, 286], strides = [1, 1]} : vector<8x324xf32> to vector<8x286xf32>
    %cst_20 = arith.constant dense<0.000000e+00> : vector<4x286xf32>
    %31 = tpu.matmul %29, %30, %cst_20 {dimension_numbers = #tpu.dot_dimension_numbers<[1], [0], [0], [1], [0, 0, 1, 1], [], []>} : vector<4x8xf32>, vector<8x286xf32>, vector<4x286xf32> -> vector<4x286xf32>
    %32 = arith.addf %27, %31 : vector<4x286xf32>
    %c4 = arith.constant 4 : index
    %c0_21 = arith.constant 0 : index
    %c0_22 = arith.constant 0 : index
    %33 = vector.load %arg5[%c4, %c0_21, %c0_22] : memref<9x4x8xf32, #tpu.memory_space<vmem>>, vector<1x4x8xf32>
    %34 = vector.shape_cast %33 : vector<1x4x8xf32> to vector<4x8xf32>
    %35 = vector.extract_strided_slice %11 {offsets = [0, 19], sizes = [8, 286], strides = [1, 1]} : vector<8x324xf32> to vector<8x286xf32>
    %cst_23 = arith.constant dense<0.000000e+00> : vector<4x286xf32>
    %36 = tpu.matmul %34, %35, %cst_23 {dimension_numbers = #tpu.dot_dimension_numbers<[1], [0], [0], [1], [0, 0, 1, 1], [], []>} : vector<4x8xf32>, vector<8x286xf32>, vector<4x286xf32> -> vector<4x286xf32>
    %37 = arith.addf %32, %36 : vector<4x286xf32>
    %c5 = arith.constant 5 : index
    %c0_24 = arith.constant 0 : index
    %c0_25 = arith.constant 0 : index
    %38 = vector.load %arg5[%c5, %c0_24, %c0_25] : memref<9x4x8xf32, #tpu.memory_space<vmem>>, vector<1x4x8xf32>
    %39 = vector.shape_cast %38 : vector<1x4x8xf32> to vector<4x8xf32>
    %40 = vector.extract_strided_slice %11 {offsets = [0, 20], sizes = [8, 286], strides = [1, 1]} : vector<8x324xf32> to vector<8x286xf32>
    %cst_26 = arith.constant dense<0.000000e+00> : vector<4x286xf32>
    %41 = tpu.matmul %39, %40, %cst_26 {dimension_numbers = #tpu.dot_dimension_numbers<[1], [0], [0], [1], [0, 0, 1, 1], [], []>} : vector<4x8xf32>, vector<8x286xf32>, vector<4x286xf32> -> vector<4x286xf32>
    %42 = arith.addf %37, %41 : vector<4x286xf32>
    %c6 = arith.constant 6 : index
    %c0_27 = arith.constant 0 : index
    %c0_28 = arith.constant 0 : index
    %43 = vector.load %arg5[%c6, %c0_27, %c0_28] : memref<9x4x8xf32, #tpu.memory_space<vmem>>, vector<1x4x8xf32>
    %44 = vector.shape_cast %43 : vector<1x4x8xf32> to vector<4x8xf32>
    %45 = vector.extract_strided_slice %11 {offsets = [0, 36], sizes = [8, 286], strides = [1, 1]} : vector<8x324xf32> to vector<8x286xf32>
    %cst_29 = arith.constant dense<0.000000e+00> : vector<4x286xf32>
    %46 = tpu.matmul %44, %45, %cst_29 {dimension_numbers = #tpu.dot_dimension_numbers<[1], [0], [0], [1], [0, 0, 1, 1], [], []>} : vector<4x8xf32>, vector<8x286xf32>, vector<4x286xf32> -> vector<4x286xf32>
    %47 = arith.addf %42, %46 : vector<4x286xf32>
    %c7 = arith.constant 7 : index
    %c0_30 = arith.constant 0 : index
    %c0_31 = arith.constant 0 : index
    %48 = vector.load %arg5[%c7, %c0_30, %c0_31] : memref<9x4x8xf32, #tpu.memory_space<vmem>>, vector<1x4x8xf32>
    %49 = vector.shape_cast %48 : vector<1x4x8xf32> to vector<4x8xf32>
    %50 = vector.extract_strided_slice %11 {offsets = [0, 37], sizes = [8, 286], strides = [1, 1]} : vector<8x324xf32> to vector<8x286xf32>
    %cst_32 = arith.constant dense<0.000000e+00> : vector<4x286xf32>
    %51 = tpu.matmul %49, %50, %cst_32 {dimension_numbers = #tpu.dot_dimension_numbers<[1], [0], [0], [1], [0, 0, 1, 1], [], []>} : vector<4x8xf32>, vector<8x286xf32>, vector<4x286xf32> -> vector<4x286xf32>
    %52 = arith.addf %47, %51 : vector<4x286xf32>
    %c8 = arith.constant 8 : index
    %c0_33 = arith.constant 0 : index
    %c0_34 = arith.constant 0 : index
    %53 = vector.load %arg5[%c8, %c0_33, %c0_34] : memref<9x4x8xf32, #tpu.memory_space<vmem>>, vector<1x4x8xf32>
    %54 = vector.shape_cast %53 : vector<1x4x8xf32> to vector<4x8xf32>
    %55 = vector.extract_strided_slice %11 {offsets = [0, 38], sizes = [8, 286], strides = [1, 1]} : vector<8x324xf32> to vector<8x286xf32>
    %cst_35 = arith.constant dense<0.000000e+00> : vector<4x286xf32>
    %56 = tpu.matmul %54, %55, %cst_35 {dimension_numbers = #tpu.dot_dimension_numbers<[1], [0], [0], [1], [0, 0, 1, 1], [], []>} : vector<4x8xf32>, vector<8x286xf32>, vector<4x286xf32> -> vector<4x286xf32>
    %57 = arith.addf %52, %56 : vector<4x286xf32>
    %c0_36 = arith.constant 0 : index
    %c0_37 = arith.constant 0 : index
    %c0_38 = arith.constant 0 : index
    %58 = vector.load %arg6[%c0_36, %c0_37, %c0_38] : memref<1x4x1xf32, #tpu.memory_space<vmem>>, vector<1x4x1xf32>
    %59 = vector.shape_cast %58 : vector<1x4x1xf32> to vector<4x1xf32>
    %60 = vector.broadcast %59 : vector<4x1xf32> to vector<4x286xf32>
    %61 = arith.addf %57, %60 : vector<4x286xf32>
    %62 = vector.broadcast %1 : f32 to vector<4x286xf32>
    %63 = arith.mulf %61, %62 : vector<4x286xf32>
    %64 = vector.extract_strided_slice %5 {offsets = [0, 19], sizes = [4, 286], strides = [1, 1]} : vector<4x324xf32> to vector<4x286xf32>
    %65 = arith.addf %63, %64 : vector<4x286xf32>
    %c0_39 = arith.constant 0 : index
    %c0_40 = arith.constant 0 : index
    %66 = vector.load %arg7[%c0_39, %c0_40] : memref<1x286xf32, #tpu.memory_space<vmem>>, vector<1x286xf32>
    %67 = vector.broadcast %66 : vector<1x286xf32> to vector<4x286xf32>
    %68 = arith.mulf %67, %65 : vector<4x286xf32>
    %69 = arith.mulf %68, %65 : vector<4x286xf32>
    %cst_41 = arith.constant dense<0.000000e+00> : vector<286xf32>
    %70 = vector.multi_reduction <add>, %69, %cst_41 [0] : vector<4x286xf32> to vector<286xf32>
    %71 = vector.shape_cast %70 : vector<286xf32> to vector<1x286xf32>
    %72 = vector.shape_cast %71 : vector<1x286xf32> to vector<1x1x286xf32>
    %cst_42 = arith.constant dense<0.000000e+00> : vector<1xf32>
    %73 = vector.multi_reduction <add>, %72, %cst_42 [1, 2] : vector<1x1x286xf32> to vector<1xf32>
    %74 = vector.shape_cast %73 : vector<1xf32> to vector<1x1x1xf32>
    %75 = vector.extract %74[0, 0, 0] : f32 from vector<1x1x1xf32>
    %76 = vector.broadcast %75 : f32 to vector<1x1x128xf32>
    %c0_43 = arith.constant 0 : index
    %c0_44 = arith.constant 0 : index
    %c0_45 = arith.constant 0 : index
    %77 = vector.load %arg8[%c0_43, %c0_44, %c0_45] : memref<1x1x128xf32, #tpu.memory_space<vmem>>, vector<1x1x128xf32>
    tpu.vector_store %arg8[%c0_43, %c0_44, %c0_45], %76 {strides = array<i32>} : memref<1x1x128xf32, #tpu.memory_space<vmem>>, vector<1x1x128xf32>,
    return
  }
  func.func @transform_0(%arg0: i32, %arg1: memref<2xf32, #tpu.memory_space<smem>>) -> (i32, i32, i32) {
    %c0_i32 = arith.constant 0 : i32
    %c0_i32_0 = arith.constant 0 : i32
    %c0_i32_1 = arith.constant 0 : i32
    return %arg0, %c0_i32, %c0_i32_0 : i32, i32, i32
  }
  func.func @transform_1(%arg0: i32, %arg1: memref<2xf32, #tpu.memory_space<smem>>) -> (i32, i32, i32) {
    %c0_i32 = arith.constant 0 : i32
    %c0_i32_0 = arith.constant 0 : i32
    %c0_i32_1 = arith.constant 0 : i32
    return %arg0, %c0_i32, %c0_i32_0 : i32, i32, i32
  }
  func.func @transform_2(%arg0: i32, %arg1: memref<2xf32, #tpu.memory_space<smem>>) -> (i32, i32, i32) {
    %c0_i32 = arith.constant 0 : i32
    %c0_i32_0 = arith.constant 0 : i32
    %c0_i32_1 = arith.constant 0 : i32
    return %arg0, %c0_i32, %c0_i32_0 : i32, i32, i32
  }
  func.func @transform_3(%arg0: i32, %arg1: memref<2xf32, #tpu.memory_space<smem>>) -> (i32, i32, i32) {
    %c0_i32 = arith.constant 0 : i32
    %c0_i32_0 = arith.constant 0 : i32
    %c0_i32_1 = arith.constant 0 : i32
    %c0_i32_2 = arith.constant 0 : i32
    return %c0_i32, %c0_i32_0, %c0_i32_1 : i32, i32, i32
  }
  func.func @transform_4(%arg0: i32, %arg1: memref<2xf32, #tpu.memory_space<smem>>) -> (i32, i32, i32) {
    %c0_i32 = arith.constant 0 : i32
    %c0_i32_0 = arith.constant 0 : i32
    %c0_i32_1 = arith.constant 0 : i32
    return %arg0, %c0_i32, %c0_i32_0 : i32, i32, i32
  }
  func.func @transform_5(%arg0: i32, %arg1: memref<2xf32, #tpu.memory_space<smem>>) -> (i32, i32) {
    %c0_i32 = arith.constant 0 : i32
    %c0_i32_0 = arith.constant 0 : i32
    %c0_i32_1 = arith.constant 0 : i32
    return %c0_i32, %c0_i32_0 : i32, i32
  }
  func.func @transform_6(%arg0: i32, %arg1: memref<2xf32, #tpu.memory_space<smem>>) -> (i32, i32, i32) {
    %c0_i32 = arith.constant 0 : i32
    %c0_i32_0 = arith.constant 0 : i32
    %c0_i32_1 = arith.constant 0 : i32
    return %arg0, %c0_i32, %c0_i32_0 : i32, i32, i32
  }
}

</mosaic_0001>

<bundles_post_ra>
// kernel: tpu_custom_call.1
= control target key start
LH: loop header
LB: loop body
LE: loop exit
PB: predicated region body
PF: predicated region fallthrough
CT: control target
= control target key end

     0   :  { %s2508_s0 = inlined_call_operand.vmem [shape: f32[2], index: 0, kind: input, shape index: {}]   ;;  %s2509_s1 = inlined_call_operand.vmem [shape: f32[2,4,324], index: 1, kind: input, shape index: {}]   ;;  %s2510_s2 = inlined_call_operand.vmem [shape: f32[2,4,324], index: 2, kind: input, shape index: {}]   ;;  %s2511_s3 = inlined_call_operand.vmem [shape: f32[2,4,324], index: 3, kind: input, shape index: {}]   ;;  %s2512_s4 = inlined_call_operand.vmem [shape: f32[9,4,8], index: 4, kind: input, shape index: {}]   ;;  %s2513_s5 = inlined_call_operand.vmem [shape: f32[2,4,1], index: 5, kind: input, shape index: {}]   ;;  %s2514_s6 = inlined_call_operand.vmem [shape: f32[1,286], index: 6, kind: input, shape index: {}]   ;;  %s2515_s7 = inlined_call_operand.hbm [shape: f32[2,1,128], index: 7, kind: output, shape index: {}]  }
   0x1   :  { %s12_s26 = sshll.u32 %s2508_s0, 4  ;;  %s13_s26 = int_to_ptr.vmem [resolvable:$true] %s12_s26 }
   0x2   :  { %s2141_s27 = scalar_lea.vmem %s13_s26, 16  ;;  %p2146_p1 = scmp.lt.s32.totalorder %s13_s26, %s13_s26 }
   0x3   :  { %p2142_p0 = scmp.ne.s32.totalorder %s13_s26, %s2141_s27  ;;  %p2147_p2 = scmp.lt.s32.totalorder %s2141_s27, %s2141_s27 }
   0x5   :  { %p2148_p3 = por %p2147_p2, %p2146_p1 }
   0x7   :  { %p2149_p4 = pnand %p2148_p3, %p2142_p0 }
   0x9   :  { %2152 = shalt.err (!%p2149_p4)  }
   0xa   :  { %s2219_s28 = smov [#allocation3]  }
   0xb   :  { %15 = dma.vmem_to_smem %s13_s26, 16, %s2219_s28, [#allocation2] }
   0xc   :  { %2197 = dma.done.wait [#allocation2], 16 }
   0xd   :  { %2198 = vsyncadd [#allocation2], 4294967280 }
   0xe   :  { %17 = sfence }
   0xf   :  { %18 = vsyncpa [#allocation5], 0 }
  0x10   :  { %20 = vsyncpa [#allocation5 + $0x1], 0  ;;  %s2275_s29 = smov 0   ;;  %s2277_s30 = smov 0  }
  0x11   :  { %s2279_s0 = smov 0   ;;  %s2281_s8 = smov 0  }
  0x12 LB: > { %s2296_s9 = sadd.s32 4294967295, %s2217_s8   ;;  %s1968_s10 = sadd.s32 4294967294, %s2217_s8   ;;  %s2217_s8 = sphi %s2281_s8, %s2521_s8   ;;  %s2213_s0 = sphi %s2279_s0, %s2520_s0   ;;  %s2209_s30 = sphi %s2277_s30, %s2519_s30   ;;  %s2205_s29 = sphi %s2275_s29, %s2518_s29  }
  0x13   : > { %s2300_s11 = sadd.s32 1, %s2217_s8   ;;  %s179_s12 = sadd.s32 1, %s2213_s0 }
  0x14   : > { %s176_s13 = ssub.s32 %s2217_s8, %s2300_s11  ;;  %p189_p5 = scmp.ne.s32.totalorder %s2213_s0, %s2209_s30 }
  0x15   : > { %p177_p6 = scmp.eq.s32.totalorder %s176_s13, 0  ;;  %p190_p7 = scmp.eq.s32.totalorder %s2296_s9, 1 }
  0x16   : > { %p195_p8 = scmp.ne.s32.totalorder %s2209_s30, %s2205_s29  ;;  %p196_p9 = scmp.eq.s32.totalorder %s1968_s10, 1 }
  0x17   : > { %s2311_s14 = scalar_select %p177_p6, %s2213_s0, %s179_s12  }
  0x18   : > { %p2313_p10 = por %p190_p7, %p189_p5  ;;  %p2317_p11 = por %p196_p9, %p195_p8 }
  0x19   : > { %p1971_p12 = scmp.ge.s32.totalorder %s2217_s8, 1  ;;  %p251_p13 = scmp.lt.s32.totalorder %s2217_s8, 3 }
  0x1b   : > { %p252_p0 = pnand %p1971_p12, %p251_p13 }
  0x1c   : > { %p294_p1 = scmp.lt.s32.totalorder (!%p252_p0), %s2296_s9, 1  ;;  %s313_s17 = sld [smem:[#allocation3 + %s2296_s9]] (!%p252_p0)  ;;  %v2220_v0 = vmov (!%p252_p0), 0.0   ;;  %vm334_vm0 = vcmask (!%p252_p0), 1043456   ;;  %vm2221_vm1 = vmmov (!%p252_p0), 0   ;;  %v2230_v19 = vmov (!%p252_p0), 0  }
  0x1d   : > { %255 = sbr.rel (%p252_p0) target bundleno = 695 (0x2b7), region = 44  ;;  %2023 = vmatprep.subr.mxu1 (!%p252_p0), %v2220_v0  ;;  %424 = vmatprep.mubr.f32.mxu0 (!%p252_p0), %v2220_v0  ;;  %s2222_s10 = smov (!%p252_p0), 127   ;;  %vm350_vm2 = vcmask (!%p252_p0), 1039360   ;;  %v1976_v25 = vld [vmem:[%s2512_s4 + $0x4] sm:$0xf] (!%p252_p0)  ;;  %vm356_vm3 = vcmask (!%p252_p0), 64512  }
  0x1e   : > { %2025 = vmatprep.mubr.msk.f32.mxu1 (!%p252_p0), %vm2221_vm1, %v2220_v0  ;;  %s2223_s12 = smov (!%p252_p0), 126   ;;  %s2224_s13 = smov (!%p252_p0), 110   ;;  %2138 = vset.pattern.permute.xlu0 (!%p252_p0), %v2230_v19  ;;  %vm653_vm4 = vcmask (!%p252_p0), 1031168   ;;  %v338_v31 = vld [vmem:[%s2512_s4] sm:$0xf] (!%p252_p0)  ;;  %vm814_vm5 = vcmask (!%p252_p0), 900096  }
  0x1f   : > { %s2227_s20 = smov (!%p252_p0), 92   ;;  %s2228_s21 = smov (!%p252_p0), 91   ;;  %v1981_v33 = vld [vmem:[%s2512_s4 + $0x8] sm:$0xf] (!%p252_p0)  ;;  %v1984_v38 = vld [vmem:[%s2512_s4 + $0xc] sm:$0xf] (!%p252_p0) }
  0x20   : > { %vm975_vm6 = vcmask (!%p252_p0), 891904   ;;  %v1987_v41 = vld [vmem:[%s2512_s4 + $0x10] sm:$0xf] (!%p252_p0)  ;;  %v1990_v46 = vld [vmem:[%s2512_s4 + $0x14] sm:$0xf] (!%p252_p0)  ;;  %vm1136_vm7 = vcmask (!%p252_p0), 883712  }
  0x21   : > { %v1993_v53 = vld [vmem:[%s2512_s4 + $0x18] sm:$0xf] (!%p252_p0)  ;;  %vm1297_vm8 = vcmask (!%p252_p0), 752640   ;;  %v1996_v56 = vld [vmem:[%s2512_s4 + $0x1c] sm:$0xf] (!%p252_p0)  ;;  %vm1458_vm9 = vcmask (!%p252_p0), 744448  }
  0x22   : > { %v2337_v1 = vstv (!%p252_p0), %s313_s17  ;;  %s2225_s17 = smov (!%p252_p0), 109   ;;  %v1999_v61 = vld [vmem:[%s2512_s4 + $0x20] sm:$0xf] (!%p252_p0)  ;;  %vm1619_vm10 = vcmask (!%p252_p0), 736256   ;;  %vm1838_vm11 = vcmask (!%p252_p0), 240640   ;;  %vm1846_vm12 = vcmask (!%p252_p0), 1040384  }
  0x23   : > { %vm1850_vm13 = vcmask (!%p252_p0), 237568  }
  0x24   : > { %s2326_s18 = scalar_select %p294_p1, %s2296_s9, 1 }
  0x26   : > { %s2084_s19 = smul.u32 12, %s2326_s18  ;;  %s1975_s23 = sshll.u32 %s2326_s18, 2 }
  0x27   : > { %s312_s26 = scalar_lea.vmem %s2513_s5, %s1975_s23 }
  0x28   : > { %s298_s22 = scalar_lea.vmem %s2509_s1, %s2084_s19  ;;  %s303_s25 = scalar_lea.vmem %s2510_s2, %s2084_s19  ;;  %v1772_v20 = vld [vmem:[%s312_s26] sm:$0xf] }
  0x29   : > { %s308_s28 = scalar_lea.vmem %s2511_s3, %s2084_s19  ;;  %v314_v2 = vld [vmem:[%s298_s22] sm:$0xff]  ;;  %v319_v6 = vld [vmem:[%s303_s25 + $0x8] sm:$0xf]  ;;  %s2226_s19 = smov 108  }
  0x2a   : > { %v318_v3 = vld [vmem:[%s303_s25] sm:$0xff]  ;;  %v317_v5 = vld [vmem:[%s308_s28 + $0x8] sm:$0xf]  ;;  %v326_v8 = vcombine.high %v314_v2, %v314_v2 }
  0x2b   : > { %v316_v4 = vld [vmem:[%s308_s28] sm:$0xff]  ;;  %v322_v9 = vmul.f32 %v2337_v1, %v317_v5  ;;  %v315_v12 = vld [vmem:[%s298_s22 + $0x8] sm:$0xf]  ;;  %s2229_s22 = smov 90  }
  0x2c   : > { %v321_v7 = vmul.f32 %v2337_v1, %v316_v4  ;;  %v1786_v18 = vcombine.high %v316_v4, %v316_v4 }
  0x2d   : > { %v324_v11 = vadd.f32 %v322_v9, %v319_v6 }
  0x2e   : > { %v323_v10 = vadd.f32 %v321_v7, %v318_v3 }
  0x2f   : > { %v331_v15 = vcombine.low %v324_v11, %v324_v11 }
  0x30   : > { %v2347_v13 = vsel %vm334_vm0, %v326_v8, %v323_v10  ;;  %v330_v14 = vcombine.low %v323_v10, %v323_v10 }
  0x31   : > { %346 = vrot.lane.b32.xlu0 %v2347_v13, %s2222_s10  ;;  %v337_v17 = vsel %vm334_vm0, %v315_v12, %v331_v15 }
  0x32   : > { %v335_v16 = vsel %vm334_vm0, %v314_v2, %v330_v14 }
  0x33   : > { %344 = vrot.lane.b32.xlu1 %v335_v16, %s2222_s10 }
  0x35   : > { %348 = vrot.lane.b32.xlu0 %v337_v17, %s2222_s10 }
  0x37   : > { %649 = vrot.lane.b32.xlu1 %v2347_v13, %s2223_s12 }
  0x39   : > { %651 = vrot.lane.b32.xlu0 %v337_v17, %s2223_s12 }
  0x3b   : > { %647 = vrot.lane.b32.xlu1 %v335_v16, %s2223_s12 }
  0x3d   : > { %810 = vrot.lane.b32.xlu0 %v2347_v13, %s2224_s13 }
  0x3f   : > { %812 = vrot.lane.b32.xlu1 %v337_v17, %s2224_s13 }
  0x41   : > { %808 = vrot.lane.b32.xlu0 %v335_v16, %s2224_s13  ;;  %s292_s13 = sand.u32 1, %s2209_s30  }
  0x42   : > { %s1865_s25 = scalar_lea.sflag [#allocation5], %s292_s13 }
  0x43   : > { %971 = vrot.lane.b32.xlu1 %v2347_v13, %s2225_s17 }
  0x45   : > { %973 = vrot.lane.b32.xlu0 %v337_v17, %s2225_s17 }
  0x47   : > { %969 = vrot.lane.b32.xlu1 %v335_v16, %s2225_s17 }
  0x49   : > { %1132 = vrot.lane.b32.xlu0 %v2347_v13, %s2226_s19 }
  0x4b   : > { %1134 = vrot.lane.b32.xlu1 %v337_v17, %s2226_s19 }
  0x4d   : > { %1130 = vrot.lane.b32.xlu0 %v335_v16, %s2226_s19 }
  0x4f   : > { %1293 = vrot.lane.b32.xlu1 %v2347_v13, %s2227_s20 }
  0x51   : > { %1295 = vrot.lane.b32.xlu0 %v337_v17, %s2227_s20 }
  0x53   : > { %1291 = vrot.lane.b32.xlu1 %v335_v16, %s2227_s20  ;;  %s2002_s20 = sshll.u32 %s2296_s9, 4  ;;  %s2231_s9 = smov [#allocation4]  }
  0x54   : > { %s2468_s24 = scalar_lea.hbm %s2515_s7, %s2002_s20  ;;  %s2157_s27 = sshll.u32 %s2231_s9, 4  ;;  %s2158_s27 = int_to_ptr.vmem [resolvable:$false] %s2157_s27 }
  0x55   : > { %1454 = vrot.lane.b32.xlu0 %v2347_v13, %s2228_s21  ;;  %s2159_s28 = scalar_lea.vmem %s2158_s27, 32 }
  0x57   : > { %1456 = vrot.lane.b32.xlu1 %v337_v17, %s2228_s21 }
  0x59   : > { %1452 = vrot.lane.b32.xlu0 %v335_v16, %s2228_s21 }
  0x5b   : > { %1615 = vrot.lane.b32.xlu1 %v2347_v13, %s2229_s22 }
  0x5d   : > { %1617 = vrot.lane.b32.xlu0 %v337_v17, %s2229_s22 }
  0x5f   : > { %1613 = vrot.lane.b32.xlu1 %v335_v16, %s2229_s22 }
  0x61   : > { %1775 = vperm.xlu0 %2138, %v1772_v20  }
  0x63   : > { %1787 = vrot.lane.b32.xlu1 %v316_v4, %s2225_s17 }
  0x65   : > { %1791 = vrot.lane.b32.xlu0 %v317_v5, %s2225_s17 }
  0x67   : > { %1789 = vrot.lane.b32.xlu1 %v1786_v18, %s2225_s17  ;;  %s293_s17 = scalar_lea.vmem [#allocation4], %s292_s13 }
  0x68   : > { %s1877_s19 = sshll.u32 %s293_s17, 4  ;;  %s2463_s19 = int_to_ptr.vmem [resolvable:$true] %s1877_s19 }
  0x69   : > { %s2153_s26 = scalar_lea.vmem %s2463_s19, 16  ;;  %p2160_p5 = scmp.lt.s32.totalorder %s2463_s19, %s2158_s27 }
  0x6a   : > { %p2154_p2 = scmp.ne.s32.totalorder %s2463_s19, %s2153_s26  ;;  %p2161_p6 = scmp.lt.s32.totalorder %s2159_s28, %s2153_s26 }
  0x6c   : > { %p2155_p3 = pnand %p2154_p2, %p2313_p10  ;;  %p2162_p7 = por %p2161_p6, %p2160_p5 }
  0x6e   : > { %p2156_p4 = pneg %p2155_p3 }
  0x70   : > { %p2163_p8 = pnand %p2162_p7, %p2156_p4 }
  0xa3   : > { %v347_v21 = vpop.permute.xlu0 %346 }
  0xa5   : > { %v345_v22 = vpop.permute.xlu1 %344 }
  0xa6   : > { %v351_v27 = vsel %vm350_vm2, %v345_v22, %v347_v21 }
  0xa7   : > { %v349_v23 = vpop.permute.xlu0 %348 }
  0xa8   : > { %2024 = vmatpush3.msra.mxu1 %v349_v23  ;;  %v352_v24 = vsel %vm350_vm2, %v347_v21, %v349_v23 }
  0xa9   : > { %360 = vmatprep.subr.mxu0 %v352_v24  ;;  %v650_v26 = vpop.permute.xlu1 %649  ;;  %2026 = vmatmul.mubr.msk.f32.vlgmr.msra.gmra.mrb[0].mxu1 %vm356_vm3, %v1976_v25 }
  0xaa   : > { %361 = vmatpush1.msra.mxu0 %v351_v27  ;;  %2028 = vmatprep.subr.mxu1 %v2220_v0 }
  0xab   : > { %1977 = vmatmul.mubr.msk.f32.vlgmr.msra.gmra.mrb[0].mxu0 %vm356_vm3, %v1976_v25  ;;  %504 = vmatprep.subr.mxu0 %v2347_v13  ;;  %v652_v28 = vpop.permute.xlu0 %651 }
  0xac   : > { %505 = vmatpush1.msra.mxu0 %v335_v16  ;;  %2029 = vmatpush3.msra.mxu1 %v337_v17  ;;  %v655_v29 = vsel %vm653_vm4, %v650_v26, %v652_v28 }
  0xad   : > { %v648_v30 = vpop.permute.xlu1 %647  ;;  %662 = vmatprep.subr.mxu0 %v655_v29  ;;  %2030 = vmatprep.mubr.msk.f32.mxu1 %vm2221_vm1, %v2220_v0 }
  0xae   : > { %2033 = vmatprep.subr.mxu1 %v2220_v0  ;;  %568 = vmatprep.mubr.f32.mxu0 %v2220_v0  ;;  %v654_v34 = vsel %vm653_vm4, %v648_v30, %v650_v26 }
  0xaf   : > { %v811_v32 = vpop.permute.xlu0 %810  ;;  %2031 = vmatmul.mubr.msk.f32.vlgmr.msra.gmra.mrb[2].mxu1 %vm356_vm3, %v338_v31 }
  0xb0   : > { %2034 = vmatpush3.msra.mxu1 %v652_v28  ;;  %2035 = vmatprep.mubr.msk.f32.mxu1 %vm2221_vm1, %v2220_v0 }
  0xb1   : > { %v813_v35 = vpop.permute.xlu1 %812  ;;  %2038 = vmatprep.subr.mxu1 %v2220_v0 }
  0xb2   : > { %v816_v36 = vsel %vm814_vm5, %v811_v32, %v813_v35 }
  0xb3   : > { %1979 = vmatmul.mubr.msk.f32.vlgmr.msra.gmra.mrb[0].mxu0 %vm356_vm3, %v338_v31  ;;  %v809_v37 = vpop.permute.xlu0 %808  ;;  %2036 = vmatmul.mubr.msk.f32.vlgmr.msra.gmra.mrb[4].mxu1 %vm356_vm3, %v1981_v33 }
  0xb4   : > { %663 = vmatpush1.msra.mxu0 %v654_v34  ;;  %726 = vmatprep.mubr.f32.mxu0 %v2220_v0  ;;  %v815_v42 = vsel %vm814_vm5, %v809_v37, %v811_v32 }
  0xb5   : > { %823 = vmatprep.subr.mxu0 %v816_v36  ;;  %v972_v39 = vpop.permute.xlu1 %971  ;;  %2039 = vmatpush3.msra.mxu1 %v813_v35 }
  0xb6   : > { %2040 = vmatprep.mubr.msk.f32.mxu1 %vm2221_vm1, %v2220_v0  ;;  %2043 = vmatprep.subr.mxu1 %v2220_v0 }
  0xb7   : > { %v974_v40 = vpop.permute.xlu0 %973  ;;  %2041 = vmatmul.mubr.msk.f32.vlgmr.msra.gmra.mrb[6].mxu1 %vm356_vm3, %v1984_v38 }
  0xb8   : > { %2044 = vmatpush3.msra.mxu1 %v974_v40  ;;  %2045 = vmatprep.mubr.msk.f32.mxu1 %vm2221_vm1, %v2220_v0  ;;  %v977_v44 = vsel %vm975_vm6, %v972_v39, %v974_v40 }
  0xb9   : > { %v970_v43 = vpop.permute.xlu1 %969  ;;  %2048 = vmatprep.subr.mxu1 %v2220_v0 }
  0xba   : > { %v976_v49 = vsel %vm975_vm6, %v970_v43, %v972_v39  ;;  %v1801_v39 = vld [vmem:[%s2514_s6] sm:$0x7] }
  0xbb   : > { %1982 = vmatmul.mubr.msk.f32.vlgmr.msra.gmra.mrb[0].mxu0 %vm356_vm3, %v1981_v33  ;;  %v1133_v45 = vpop.permute.xlu0 %1132  ;;  %2046 = vmatmul.mubr.msk.f32.vlgmr.msra.gmra.mrb[8].mxu1 %vm356_vm3, %v1987_v41  ;;  %v1803_v33 = vlaneseq }
  0xbc   : > { %824 = vmatpush1.msra.mxu0 %v815_v42  ;;  %887 = vmatprep.mubr.f32.mxu0 %v2220_v0 }
  0xbd   : > { %984 = vmatprep.subr.mxu0 %v977_v44  ;;  %v1135_v47 = vpop.permute.xlu1 %1134  ;;  %2050 = vmatprep.mubr.msk.f32.mxu1 %vm2221_vm1, %v2220_v0  ;;  %v1804_v36 = vshrl.u32 %v1803_v33, 7 }
  0xbe   : > { %2049 = vmatpush3.msra.mxu1 %v1135_v47  ;;  %v1138_v51 = vsel %vm1136_vm7, %v1133_v45, %v1135_v47 }
  0xbf   : > { %v1131_v48 = vpop.permute.xlu0 %1130  ;;  %2051 = vmatmul.mubr.msk.f32.vlgmr.msra.gmra.mrb[10].mxu1 %vm356_vm3, %v1990_v46  ;;  %2053 = vmatprep.subr.mxu1 %v2220_v0 }
  0xc0   : > { %2055 = vmatprep.mubr.msk.f32.mxu1 %vm2221_vm1, %v2220_v0  ;;  %v1137_v57 = vsel %vm1136_vm7, %v1131_v48, %v1133_v45 }
  0xc1   : > { %v1294_v50 = vpop.permute.xlu1 %1293 }
  0xc3   : > { %1985 = vmatmul.mubr.msk.f32.vlgmr.msra.gmra.mrb[0].mxu0 %vm356_vm3, %v1984_v38  ;;  %v1296_v52 = vpop.permute.xlu0 %1295  ;;  %v1813_v38 = vsub.s32 2, %v1804_v36 }
  0xc4   : > { %985 = vmatpush1.msra.mxu0 %v976_v49  ;;  %1048 = vmatprep.mubr.f32.mxu0 %v2220_v0  ;;  %v1299_v59 = vsel %vm1297_vm8, %v1294_v50, %v1296_v52  ;;  %v1809_v49 = vsub.s32 1, %v1804_v36 }
  0xc5   : > { %1145 = vmatprep.subr.mxu0 %v1138_v51  ;;  %v1292_v54 = vpop.permute.xlu1 %1291  ;;  %2054 = vmatpush3.msra.mxu1 %v1296_v52 }
  0xc6   : > { %2056 = vmatmul.mubr.msk.f32.vlgmr.msra.gmra.mrb[12].mxu1 %vm356_vm3, %v1993_v53  ;;  %2058 = vmatprep.subr.mxu1 %v2220_v0  ;;  %v1298_v63 = vsel %vm1297_vm8, %v1292_v54, %v1294_v50 }
  0xc7   : > { %v1455_v55 = vpop.permute.xlu0 %1454  ;;  %2060 = vmatprep.mubr.msk.f32.mxu1 %vm2221_vm1, %v2220_v0 }
  0xc9   : > { %v1457_v58 = vpop.permute.xlu1 %1456 }
  0xca   : > { %2059 = vmatpush3.msra.mxu1 %v1457_v58  ;;  %v1460_v2 = vsel %vm1458_vm9, %v1455_v55, %v1457_v58 }
  0xcb   : > { %1988 = vmatmul.mubr.msk.f32.vlgmr.msra.gmra.mrb[0].mxu0 %vm356_vm3, %v1987_v41  ;;  %v1453_v60 = vpop.permute.xlu0 %1452  ;;  %2061 = vmatmul.mubr.msk.f32.vlgmr.msra.gmra.mrb[14].mxu1 %vm356_vm3, %v1996_v56  ;;  %v1814_v41 = vrot.slane %v1801_v39, %v1813_v38 }
  0xcc   : > { %1146 = vmatpush1.msra.mxu0 %v1137_v57  ;;  %2063 = vmatprep.subr.mxu1 %v2220_v0  ;;  %v1459_v4 = vsel %vm1458_vm9, %v1453_v60, %v1455_v55  ;;  %v1810_v60 = vrot.slane %v1801_v39, %v1809_v49 }
  0xcd   : > { %1306 = vmatprep.subr.mxu0 %v1299_v59  ;;  %1209 = vmatprep.mubr.f32.mxu0 %v2220_v0  ;;  %v1616_v3 = vpop.permute.xlu1 %1615 }
  0xce   : > { %2065 = vmatprep.mubr.msk.f32.mxu1 %vm2221_vm1, %v2220_v0 }
  0xcf   : > { %v1618_v62 = vpop.permute.xlu0 %1617 }
  0xd0   : > { %2064 = vmatpush3.msra.mxu1 %v1618_v62  ;;  %v1621_v5 = vsel %vm1619_vm10, %v1616_v3, %v1618_v62 }
  0xd1   : > { %2066 = vmatmul.mubr.msk.f32.vlgmr.msra.gmra.mrb[16].mxu1 %vm356_vm3, %v1999_v61  ;;  %v1614_v6 = vpop.permute.xlu1 %1613 }
  0xd2   : > { %v1620_v7 = vsel %vm1619_vm10, %v1614_v6, %v1616_v3 }
  0xd3   : > { %1991 = vmatmul.mubr.msk.f32.vlgmr.msra.gmra.mrb[0].mxu0 %vm356_vm3, %v1990_v46  ;;  %v1805_v46 = vsub.s32 0, %v1804_v36 }
  0xd4   : > { %1307 = vmatpush1.msra.mxu0 %v1298_v63  ;;  %1370 = vmatprep.mubr.f32.mxu0 %v2220_v0 }
  0xd5   : > { %1467 = vmatprep.subr.mxu0 %v1460_v2  ;;  %v1788_v44 = vpop.permute.xlu1 %1787 }
  0xd9   : > { %v1790_v51 = vpop.permute.xlu1 %1789 }
  0xda   : > { %v1793_v58 = vsel %vm975_vm6, %v1788_v44, %v1790_v51 }
  0xdb   : > { %1994 = vmatmul.mubr.msk.f32.vlgmr.msra.gmra.mrb[0].mxu0 %vm356_vm3, %v1993_v53 }
  0xdc   : > { %1468 = vmatpush1.msra.mxu0 %v1459_v4  ;;  %1531 = vmatprep.mubr.f32.mxu0 %v2220_v0 }
  0xdd   : > { %1628 = vmatprep.subr.mxu0 %v1621_v5 }
  0xe0   : > { %v1776_v34 = vpop.permute.xlu0 %1775 }
  0xe3   : > { %1997 = vmatmul.mubr.msk.f32.vlgmr.msra.gmra.mrb[0].mxu0 %vm356_vm3, %v1996_v56  ;;  %v1806_v56 = vrot.slane %v1801_v39, %v1805_v46 }
  0xe4   : > { %1629 = vmatpush1.msra.mxu0 %v1620_v7  ;;  %1692 = vmatprep.mubr.f32.mxu0 %v2220_v0  ;;  %v1792_v40 = vpop.permute.xlu0 %1791 }
  0xe5   : > { %v1794_v57 = vsel %vm975_vm6, %v1790_v51, %v1792_v40 }
  0xeb   : > { %2000 = vmatmul.mubr.msk.f32.vlgmr.msra.gmra.mrb[0].mxu0 %vm356_vm3, %v1999_v61 }
 0x17c   : > { %v497_v8 = vpop.f32.mrb[0].mxu1 }
 0x17d   : > { %v2027_v9 = vpop.f32.mrb[1].mxu1 }
 0x182   : > { %v641_v10 = vpop.f32.mrb[2].mxu1 }
 0x183   : > { %v642_v11 = vadd.f32 %v641_v10, %v497_v8  ;;  %v2032_v12 = vpop.f32.mrb[3].mxu1 }
 0x186   : > { %v799_v13 = vpop.f32.mrb[4].mxu1 }
 0x187   : > { %v805_v14 = vadd.f32 %v799_v13, %v642_v11  ;;  %v2037_v15 = vpop.f32.mrb[5].mxu1 }
 0x18a   : > { %v960_v16 = vpop.f32.mrb[6].mxu1 }
 0x18b   : > { %v966_v17 = vadd.f32 %v960_v16, %v805_v14  ;;  %v2042_v18 = vpop.f32.mrb[7].mxu1 }
 0x18e   : > { %v1121_v19 = vpop.f32.mrb[8].mxu1 }
 0x18f   : > { %v1127_v20 = vadd.f32 %v1121_v19, %v966_v17  ;;  %v2047_v21 = vpop.f32.mrb[9].mxu1 }
 0x192   : > { %v1282_v22 = vpop.f32.mrb[10].mxu1 }
 0x193   : > { %v1288_v23 = vadd.f32 %v1282_v22, %v1127_v20  ;;  %v2052_v24 = vpop.f32.mrb[11].mxu1 }
 0x199   : > { %v1443_v0 = vpop.f32.mrb[12].mxu1 }
 0x19a   : > { %v1449_v25 = vadd.f32 %v1443_v0, %v1288_v23  ;;  %v2057_v26 = vpop.f32.mrb[13].mxu1 }
 0x19e   : > { %v1604_v27 = vpop.f32.mrb[14].mxu1 }
 0x19f   : > { %v1610_v28 = vadd.f32 %v1604_v27, %v1449_v25  ;;  %v2062_v29 = vpop.f32.mrb[15].mxu1 }
 0x1a4   : > { %v1765_v30 = vpop.f32.mrb[16].mxu1 }
 0x1a5   : > { %v1771_v31 = vadd.f32 %v1765_v30, %v1610_v28  ;;  %v2067_v32 = vpop.f32.mrb[17].mxu1 }
 0x1a7   : > { %v1780_v35 = vadd.f32 %v1776_v34, %v1771_v31 }
 0x1a9   : > { %v1783_v37 = vmul.f32 %v1780_v35, %v2337_v1 }
 0x1ab   : > { %v1800_v42 = vadd.f32 %v1792_v40, %v1783_v37 }
 0x1ad   : > { %v1820_v43 = vmul.f32 %v1814_v41, %v1800_v42 }
 0x1af   : > { %v1823_v45 = vmul.f32 %v1820_v43, %v1800_v42 }
 0x1b1   : > { %v1839_v47 = vsel %vm1838_vm11, %v1823_v45, 0.0 }
 0x1b2   : > { %v1840_v54 = vrot.slane %v1839_v47, 4 }
 0x1b4   : > { %v1841_v63 = vadd.f32 %v1840_v54, %v1839_v47 }
 0x1b6   : > { %v1842_v6 = vrot.slane %v1841_v63, 2 }
 0x1b8   : > { %v1843_v13 = vadd.f32 %v1842_v6, %v1841_v63 }
 0x1ba   : > { %v1844_v17 = vrot.slane %v1843_v13, 1 }
 0x1bc   : > { %v1845_v22 = vadd.f32 %v1844_v17, %v1843_v13 }
 0x1be   : > { %v1694_v48 = vpop.f32.mrb[0].mxu0  ;;  %v1851_v25 = vsel %vm1850_vm13, %v1845_v22, 0.0 }
 0x1bf   : > { %v1778_v50 = vadd.f32 %v1776_v34, %v1694_v48  ;;  %v1696_v52 = vpop.f32.mrb[1].mxu0 }
 0x1c0   : > { %v1779_v53 = vadd.f32 %v1776_v34, %v1696_v52 }
 0x1c1   : > { %v1781_v55 = vmul.f32 %v1778_v50, %v2337_v1 }
 0x1c2   : > { %v1782_v59 = vmul.f32 %v1779_v53, %v2337_v1 }
 0x1c3   : > { %v1798_v61 = vadd.f32 %v1793_v58, %v1781_v55 }
 0x1c4   : > { %v1799_v62 = vadd.f32 %v1794_v57, %v1782_v59 }
 0x1c5   : > { %v1818_v2 = vmul.f32 %v1806_v56, %v1798_v61 }
 0x1c6   : > { %v1819_v3 = vmul.f32 %v1810_v60, %v1799_v62 }
 0x1c7   : > { %v1821_v4 = vmul.f32 %v1818_v2, %v1798_v61 }
 0x1c8   : > { %v1822_v5 = vmul.f32 %v1819_v3, %v1799_v62 }
 0x1c9   : > { %v1824_v7 = vsel %vm334_vm0, %v1821_v4, 0.0 }
 0x1ca   : > { %v1825_v8 = vrot.slane %v1824_v7, 4  ;;  %v1831_v9 = vsel %vm334_vm0, %v1822_v5, 0.0 }
 0x1cb   : > { %v1832_v10 = vrot.slane %v1831_v9, 4 }
 0x1cc   : > { %v1826_v11 = vadd.f32 %v1825_v8, %v1824_v7 }
 0x1cd   : > { %v1833_v12 = vadd.f32 %v1832_v10, %v1831_v9 }
 0x1ce   : > { %v1827_v14 = vrot.slane %v1826_v11, 2 }
 0x1cf   : > { %v1834_v1 = vrot.slane %v1833_v12, 2 }
 0x1d0   : > { %v1828_v15 = vadd.f32 %v1827_v14, %v1826_v11 }
 0x1d1   : > { %v1835_v16 = vadd.f32 %v1834_v1, %v1833_v12 }
 0x1d2   : > { %v1829_v18 = vrot.slane %v1828_v15, 1 }
 0x1d3   : > { %v1836_v19 = vrot.slane %v1835_v16, 1 }
 0x1d4   : > { %v1830_v20 = vadd.f32 %v1829_v18, %v1828_v15 }
 0x1d5   : > { %v1837_v21 = vadd.f32 %v1836_v19, %v1835_v16 }
 0x1d6   : > { %v1847_v23 = vsel %vm1846_vm12, %v1830_v20, 0.0 }
 0x1d7   : > { %v1848_v24 = vsel %vm1846_vm12, %v1837_v21, 0.0 }
 0x1d8   : > { %v1849_v0 = vadd.f32 %v1848_v24, %v1847_v23 }
 0x1da   : > { %v1852_v26 = vadd.f32 %v1851_v25, %v1849_v0 }
 0x1dc   : > { %1853 = vadd.xlane.f32.xlu1 %v1852_v26 }
 0x269   : > { %v1854_v27 = vpop.xlane.xlu1 %1853 }
 0x26a   : > { %v1855_v28 = vrot.slane %v1854_v27, 4 }
 0x26c   : > { %v1856_v29 = vadd.f32 %v1855_v28, %v1854_v27 }
 0x26e   : > { %v1857_v30 = vrot.slane %v1856_v29, 2 }
 0x270   : > { %v1858_v31 = vadd.f32 %v1857_v30, %v1856_v29 }
 0x272   : > { %v1859_v32 = vrot.slane %v1858_v31, 1 }
 0x274   : > { %v1860_v33 = vadd.f32 %v1859_v32, %v1858_v31 }
 0x276   : > { %2085 = vpush %v1860_v33 }
 0x2a7   : > { %s2086_s21 = spop %2085 }
 0x2a8   : > { %v1862_v34 = vstv %s2086_s21 }
 0x2a9   : > { %1863 = vst [vmem:[%s293_s17] sm:$0x1] %v1862_v34 }
 0x2aa   : > { %2166 = shalt.err (!%p2163_p8)
}
 0x2ab   : > { %s2167_s18 = scalar_lea.hbm %s2468_s24, 16  ;;  %s2171_s13 = scalar_lea.hbm %s2515_s7, 32 }
 0x2ac   : > { %p2168_p9 = scmp.ne.s32.totalorder %s2468_s24, %s2167_s18  ;;  %p2172_p0 = scmp.lt.u32.totalorder %s2468_s24, %s2515_s7 }
 0x2ad   : > { %p2173_p1 = scmp.lt.u32.totalorder %s2171_s13, %s2167_s18  ;;  %p2175_p3 = scmp.lt.u32.totalorder %s2167_s18, %s2468_s24 }
 0x2ae   : > { %p2169_p12 = pnand %p2168_p9, %p2313_p10 }
 0x2af   : > { %p2174_p2 = por %p2173_p1, %p2172_p0 }
 0x2b0   : > { %p2170_p13 = pneg %p2169_p12 }
 0x2b1   : > { %p2176_p4 = por %p2175_p3, %p2174_p2 }
 0x2b3   : > { %p2177_p5 = pnand %p2176_p4, %p2170_p13 }
 0x2b5   : > { %2180 = shalt.err (!%p2177_p5)
}
 0x2b6   : > { %2087 = dma.vmem_to_hbm [thread:$0]  (%p2313_p10), %s2463_s19, 16, %s2468_s24, %s1865_s25  }
 0x2b7 PF: > { %p2093_p6 = scmp.ge.s32.totalorder %s2217_s8, 2  ;;  %s1889_s21 = sand.u32 1, %s2205_s29  }
 0x2b8   : > { %s1890_s22 = scalar_lea.sflag [#allocation5], %s1889_s21 }
 0x2b9   : > { %p2090_p7 = pnand %p2093_p6, %p2317_p11 }
 0x2bb   : > { %2200 = dma.done.wait (!%p2090_p7), %s1890_s22, 16  }
 0x2bc   : > { %2202 = vsyncadd (!%p2090_p7), %s1890_s22, 4294967280  ;;  %p23_p8 = scmp.ge.s32.totalorder %s2300_s11, 4   ;;  %s2518_s29 = smov %s2209_s30 }
 0x2bd   : > { %s2519_s30 = smov %s2213_s0  ;;  %s2520_s0 = smov %s2311_s14 }
 0x2be   : > { %s2521_s8 = smov %s2300_s11  ;;  %25 = sbr.rel (!%p23_p8) target bundleno = 18 (0x12), region = 96 }
 0x2c5   :  { %1894 = vsyncpa [#allocation5], 1 }
 0x2c6   :  { %1896 = vsyncpa [#allocation5 + $0x1], 1 }

</bundles_post_ra>
